<compile_context>
chip_gen: v7x
topology: tpu7x:2x2x1
jax: 0.10.0
libtpu: 0.0.40
codegen_flags: <defaults>
</compile_context>

<pallas_src>
import functools

import jax
import jax.numpy as jnp
from jax.experimental import pallas as pl
from jax.experimental.pallas import tpu as pltpu

DEGREE = 3  # Chebyshev degree per KAN layer (D+1 = 4 basis polynomials)


def _cheby_features_t(t, degree):
    """Stack T_0..T_D along the sublane (K) axis.

    t: (F, TB) already tanh'ed input in [-1, 1].
    returns ((degree+1)*F, TB) float32, degree-major:
        out[d*F + i, b] = T_d(t[i, b])
    """
    polys = [jnp.ones_like(t), t]
    for _ in range(2, degree + 1):
        polys.append(2.0 * t * polys[-1] - polys[-2])
    return jnp.concatenate(polys, axis=0)


def kan_trunk_kernel(y_ref, w1_ref, w2_ref, o_ref):
    # y_ref:  (input_dim, TB)
    # w1_ref: (hidden_dim, (D+1)*input_dim)   fused-K layer-1 weights
    # w2_ref: (output_dim, (D+1)*hidden_dim)  fused-K layer-2 weights
    # Layer 1: input_dim -> hidden_dim  (single matmul, K = (D+1)*input_dim)
    t1 = jnp.tanh(y_ref[...])
    f1 = _cheby_features_t(t1, DEGREE)                       # ((D+1)*in, TB)
    h = jnp.dot(w1_ref[...], f1, preferred_element_type=jnp.float32)

    # Layer 2: hidden_dim -> output_dim (single matmul, K = (D+1)*hidden_dim)
    t2 = jnp.tanh(h)
    f2 = _cheby_features_t(t2, DEGREE)                       # ((D+1)*hid, TB)
    out = jnp.dot(w2_ref[...], f2, preferred_element_type=jnp.float32)
    o_ref[...] = out.astype(o_ref.dtype)


@functools.partial(jax.jit, static_argnames=("batch_tile",))
def kan_trunk_net(y, coeff1, coeff2, *, batch_tile=256):
    """y: (B, input_dim); coeff_l: (in_l, out_l, DEGREE+1). Returns (B, out_l2)."""
    B, input_dim = y.shape
    hidden_dim = coeff1.shape[1]
    output_dim = coeff2.shape[1]
    n_basis = DEGREE + 1
    assert batch_tile % 128 == 0, "batch_tile must be a multiple of 128 (lanes)"

    # Fused-K, lane-dense 2-D weights: w[o, d*F_in + i] = coeff[i, o, d].
    w1 = jnp.transpose(coeff1, (1, 2, 0)).reshape(
        hidden_dim, n_basis * input_dim).astype(jnp.float32)
    w2 = jnp.transpose(coeff2, (1, 2, 0)).reshape(
        output_dim, n_basis * hidden_dim).astype(jnp.float32)

    # Batch on the lane axis; pad ragged batches to a multiple of batch_tile.
    y_t = jnp.transpose(y).astype(jnp.float32)               # (in, B)
    b_pad = pl.cdiv(B, batch_tile) * batch_tile
    if b_pad != B:
        y_t = jnp.pad(y_t, ((0, 0), (0, b_pad - B)))

    grid = (b_pad // batch_tile,)

    # Advisory cost hint so XLA schedules this tiny custom call sensibly.
    cost = pl.CostEstimate(
        flops=2 * b_pad * n_basis * (input_dim * hidden_dim
                                     + hidden_dim * output_dim),
        transcendentals=b_pad * (input_dim + hidden_dim),
        bytes_accessed=4 * (b_pad * (input_dim + output_dim)
                            + int(w1.size) + int(w2.size)),
    )

    out_t = pl.pallas_call(
        kan_trunk_kernel,
        out_shape=jax.ShapeDtypeStruct((output_dim, b_pad), jnp.float32),
        grid_spec=pltpu.PrefetchScalarGridSpec(
            num_scalar_prefetch=0,
            grid=grid,
            in_specs=[
                pl.BlockSpec((input_dim, batch_tile), lambda i: (0, i)),
                pl.BlockSpec(w1.shape, lambda i: (0, 0)),   # whole, fetched once
                pl.BlockSpec(w2.shape, lambda i: (0, 0)),   # whole, fetched once
            ],
            out_specs=pl.BlockSpec((output_dim, batch_tile), lambda i: (0, i)),
        ),
        compiler_params=pltpu.CompilerParams(
            dimension_semantics=("parallel",)),
        cost_estimate=cost,
    )(y_t, w1, w2)

    return jnp.transpose(out_t)[:B]                          # (B, output_dim)


def kan_trunk_net_ref(y, coeff1, coeff2):
    """Pure-JAX reference (mirrors the PyTorch ChebyKAN forward)."""
    def layer(x, coeff):
        t = jnp.tanh(x)
        polys = [jnp.ones_like(t), t]
        for _ in range(2, DEGREE + 1):
            polys.append(2.0 * t * polys[-1] - polys[-2])
        cheby = jnp.stack(polys, axis=-1)                    # (B, in, D+1)
        return jnp.einsum("bid,iod->bo", cheby, coeff)
    return layer(layer(y, coeff1), coeff2)


if __name__ == "__main__":
    # Trunk-net style shapes: many evaluation points, small coordinate dim.
    batch = 1024         # evaluation points -> grid=(4,): 2 steps/core on v7x
    input_dim = 8        # coordinate dimension
    hidden_dim = 32
    output_dim = 16

    key = jax.random.PRNGKey(0)
    k_y, k_c1, k_c2 = jax.random.split(key, 3)

    y = jax.random.normal(k_y, (batch, input_dim), dtype=jnp.float32)
    # ChebyKANLayer init: Normal(0, 1/(in_dim*(degree+1)))
    coeff1 = jax.random.normal(
        k_c1, (input_dim, hidden_dim, DEGREE + 1), dtype=jnp.float32
    ) * (1.0 / (input_dim * (DEGREE + 1)))
    coeff2 = jax.random.normal(
        k_c2, (hidden_dim, output_dim, DEGREE + 1), dtype=jnp.float32
    ) * (1.0 / (hidden_dim * (DEGREE + 1)))

    out = kan_trunk_net(y, coeff1, coeff2, batch_tile=256)
    out = jax.block_until_ready(out)

    ref = kan_trunk_net_ref(y, coeff1, coeff2)
    if not jnp.allclose(out, ref, atol=1e-5, rtol=1e-5):
        raise AssertionError("Pallas kernel mismatch vs JAX reference")

    print("KERNEL_OK")
</pallas_src>

<mosaic_0001>
module attributes {stable_mosaic.version = 11 : i64} {
  func.func @kan_trunk_kernel(%arg0: i32, %arg1: memref<8x256xf32, #tpu.memory_space<vmem>>, %arg2: memref<32x32xf32, #tpu.memory_space<vmem>>, %arg3: memref<16x128xf32, #tpu.memory_space<vmem>>, %arg4: memref<16x256xf32, #tpu.memory_space<vmem>>) attributes {dimension_semantics = [#tpu.dimension_semantics<parallel>], iteration_bounds = array<i64: 4>, scalar_prefetch = 0 : i64, scratch_operands = 0 : i64, tpu.core_type = #tpu.core_type<tc>, window_params = [{transform_indices = @transform_0, window_bounds = array<i64: 8, 256>}, {pipeline_mode = #tpu.pipeline_mode<synchronous>, transform_indices = @transform_1, window_bounds = array<i64: 32, 32>}, {pipeline_mode = #tpu.pipeline_mode<synchronous>, transform_indices = @transform_2, window_bounds = array<i64: 16, 128>}, {transform_indices = @transform_3, window_bounds = array<i64: 16, 256>}]} {
    %c0 = arith.constant 0 : index
    %c0_0 = arith.constant 0 : index
    %0 = vector.load %arg1[%c0, %c0_0] : memref<8x256xf32, #tpu.memory_space<vmem>>, vector<8x256xf32>
    %1 = math.tanh %0 : vector<8x256xf32>
    %cst = arith.constant 1.000000e+00 : f32
    %2 = vector.broadcast %cst : f32 to vector<8x256xf32>
    %cst_1 = arith.constant 2.000000e+00 : f32
    %3 = vector.broadcast %cst_1 : f32 to vector<8x256xf32>
    %4 = arith.mulf %3, %1 : vector<8x256xf32>
    %5 = arith.mulf %4, %1 : vector<8x256xf32>
    %6 = arith.subf %5, %2 : vector<8x256xf32>
    %cst_2 = arith.constant 2.000000e+00 : f32
    %7 = vector.broadcast %cst_2 : f32 to vector<8x256xf32>
    %8 = arith.mulf %7, %1 : vector<8x256xf32>
    %9 = arith.mulf %8, %6 : vector<8x256xf32>
    %10 = arith.subf %9, %1 : vector<8x256xf32>
    %11 = tpu.concatenate %2, %1, %6, %10 in 0 : vector<8x256xf32>, vector<8x256xf32>, vector<8x256xf32>, vector<8x256xf32> -> vector<32x256xf32>
    %c0_3 = arith.constant 0 : index
    %c0_4 = arith.constant 0 : index
    %12 = vector.load %arg2[%c0_3, %c0_4] : memref<32x32xf32, #tpu.memory_space<vmem>>, vector<32x32xf32>
    %cst_5 = arith.constant dense<0.000000e+00> : vector<32x256xf32>
    %13 = tpu.matmul %12, %11, %cst_5 {dimension_numbers = #tpu.dot_dimension_numbers<[1], [0], [0], [1], [0, 0, 1, 1], [], []>} : vector<32x32xf32>, vector<32x256xf32>, vector<32x256xf32> -> vector<32x256xf32>
    %14 = math.tanh %13 : vector<32x256xf32>
    %cst_6 = arith.constant 1.000000e+00 : f32
    %15 = vector.broadcast %cst_6 : f32 to vector<32x256xf32>
    %cst_7 = arith.constant 2.000000e+00 : f32
    %16 = vector.broadcast %cst_7 : f32 to vector<32x256xf32>
    %17 = arith.mulf %16, %14 : vector<32x256xf32>
    %18 = arith.mulf %17, %14 : vector<32x256xf32>
    %19 = arith.subf %18, %15 : vector<32x256xf32>
    %cst_8 = arith.constant 2.000000e+00 : f32
    %20 = vector.broadcast %cst_8 : f32 to vector<32x256xf32>
    %21 = arith.mulf %20, %14 : vector<32x256xf32>
    %22 = arith.mulf %21, %19 : vector<32x256xf32>
    %23 = arith.subf %22, %14 : vector<32x256xf32>
    %24 = tpu.concatenate %15, %14, %19, %23 in 0 : vector<32x256xf32>, vector<32x256xf32>, vector<32x256xf32>, vector<32x256xf32> -> vector<128x256xf32>
    %c0_9 = arith.constant 0 : index
    %c0_10 = arith.constant 0 : index
    %25 = vector.load %arg3[%c0_9, %c0_10] : memref<16x128xf32, #tpu.memory_space<vmem>>, vector<16x128xf32>
    %cst_11 = arith.constant dense<0.000000e+00> : vector<16x256xf32>
    %26 = tpu.matmul %25, %24, %cst_11 {dimension_numbers = #tpu.dot_dimension_numbers<[1], [0], [0], [1], [0, 0, 1, 1], [], []>} : vector<16x128xf32>, vector<128x256xf32>, vector<16x256xf32> -> vector<16x256xf32>
    %c0_12 = arith.constant 0 : index
    %c0_13 = arith.constant 0 : index
    %27 = vector.load %arg4[%c0_12, %c0_13] : memref<16x256xf32, #tpu.memory_space<vmem>>, vector<16x256xf32>
    tpu.vector_store %arg4[%c0_12, %c0_13], %26 {strides = array<i32>} : memref<16x256xf32, #tpu.memory_space<vmem>>, vector<16x256xf32>,
    return
  }
  func.func @transform_0(%arg0: i32) -> (i32, i32) {
    %c0_i32 = arith.constant 0 : i32
    %c0_i32_0 = arith.constant 0 : i32
    return %c0_i32, %arg0 : i32, i32
  }
  func.func @transform_1(%arg0: i32) -> (i32, i32) {
    %c0_i32 = arith.constant 0 : i32
    %c0_i32_0 = arith.constant 0 : i32
    %c0_i32_1 = arith.constant 0 : i32
    return %c0_i32, %c0_i32_0 : i32, i32
  }
  func.func @transform_2(%arg0: i32) -> (i32, i32) {
    %c0_i32 = arith.constant 0 : i32
    %c0_i32_0 = arith.constant 0 : i32
    %c0_i32_1 = arith.constant 0 : i32
    return %c0_i32, %c0_i32_0 : i32, i32
  }
  func.func @transform_3(%arg0: i32) -> (i32, i32) {
    %c0_i32 = arith.constant 0 : i32
    %c0_i32_0 = arith.constant 0 : i32
    return %c0_i32, %arg0 : i32, i32
  }
}

</mosaic_0001>

<bundles_post_ra>
// kernel: kan_trunk_net.1
= control target key start
LH: loop header
LB: loop body
LE: loop exit
PB: predicated region body
PF: predicated region fallthrough
CT: control target
= control target key end

     0   :  { %8 = vsyncpa [#allocation3], 0  ;;  %s844_s0 = inlined_call_operand.vmem [shape: f32[8,1024], index: 0, kind: input, shape index: {}]   ;;  %s845_s1 = inlined_call_operand.vmem [shape: f32[32,32], index: 1, kind: input, shape index: {}]   ;;  %s846_s2 = inlined_call_operand.vmem [shape: f32[16,128], index: 2, kind: input, shape index: {}]   ;;  %s847_s3 = inlined_call_operand.hbm [shape: f32[16,1024], index: 3, kind: output, shape index: {}]  }
   0x1   :  { %10 = vsyncpa [#allocation3 + $0x1], 0  ;;  %s718_s12 = smov 0   ;;  %s720_s13 = smov 0  }
   0x2   :  { %s722_s14 = smov 0   ;;  %s724_s15 = smov 0  }
   0x3 LB: > { %s739_s16 = sadd.s32 4294967295, %s689_s15   ;;  %s499_s17 = sadd.s32 4294967294, %s689_s15   ;;  %s689_s15 = sphi %s724_s15, %s853_s15   ;;  %s685_s14 = sphi %s722_s14, %s852_s14   ;;  %s681_s13 = sphi %s720_s13, %s851_s13   ;;  %s677_s12 = sphi %s718_s12, %s850_s12  }
   0x4   : > { %s743_s18 = sadd.s32 1, %s689_s15   ;;  %s91_s19 = sadd.s32 1, %s685_s14 }
   0x5   : > { %s88_s20 = ssub.s32 %s689_s15, %s743_s18  ;;  %p101_p0 = scmp.ne.s32.totalorder %s685_s14, %s681_s13 }
   0x6   : > { %p89_p1 = scmp.eq.s32.totalorder %s88_s20, 0  ;;  %p102_p2 = scmp.eq.s32.totalorder %s739_s16, 3 }
   0x7   : > { %p107_p3 = scmp.ne.s32.totalorder %s681_s13, %s677_s12  ;;  %p108_p4 = scmp.eq.s32.totalorder %s499_s17, 3 }
   0x8   : > { %s754_s21 = scalar_select %p89_p1, %s685_s14, %s91_s19  }
   0x9   : > { %p756_p5 = por %p102_p2, %p101_p0  ;;  %p760_p6 = por %p108_p4, %p107_p3 }
   0xa   : > { %p502_p7 = scmp.ge.s32.totalorder %s689_s15, 1  ;;  %p141_p8 = scmp.lt.s32.totalorder %s689_s15, 5 }
   0xc   : > { %p142_p9 = pnand %p502_p7, %p141_p8 }
   0xd   : > { %s504_s24 = sshll.u32 (!%p142_p9), %s739_s16, 1  ;;  %v691_v0 = vmov (!%p142_p9), 0.0   ;;  %v692_v5 = vmov (!%p142_p9), 1.0   ;;  %v186_v20 = vld [vmem:[%s845_s1] sm:$0xff] (!%p142_p9)  ;;  %vm190_vm0 = vcmask (!%p142_p9), 261120   ;;  %v187_v21 = vld [vmem:[%s845_s1 + $0x8] sm:$0xff] (!%p142_p9) }
   0xe   : > { %145 = sbr.rel (%p142_p9) target bundleno = 543 (0x21f), region = 32  ;;  %p166_p10 = scmp.lt.s32.totalorder (!%p142_p9), %s504_s24, 7  ;;  %267 = vmatprep.mubr.f32.mxu0 (!%p142_p9), %v691_v0  ;;  %406 = vmatprep.mubr.f32.mxu1 (!%p142_p9), %v691_v0  ;;  %v188_v22 = vld [vmem:[%s845_s1 + $0x10] sm:$0xff] (!%p142_p9)  ;;  %v189_v23 = vld [vmem:[%s845_s1 + $0x18] sm:$0xff] (!%p142_p9)  ;;  %v693_v24 = vmov (!%p142_p9), 1.0|1.0  }
   0xf   : > { %534 = vmatprep.subr.bf16.mxu1 (!%p142_p9), %v693_v24  ;;  %s162_s20 = sand.u32 (!%p142_p9), 1, %s681_s13   ;;  %s525_s27 = sshll.u32 (!%p142_p9), %s739_s16, 8 }
  0x10   : > { %535 = vmatpush1.bf16.msra.mxu1 (!%p142_p9), %v693_v24  ;;  %s801_s30 = scalar_lea.hbm (!%p142_p9), %s847_s3, %s525_s27  ;;  %s803_s4 = scalar_lea.sflag (!%p142_p9), [#allocation3], %s162_s20 }
  0x11   : > { %536 = vmatprep.subr.bf16.mxu1 (!%p142_p9), %v693_v24  ;;  %s694_s5 = smov (!%p142_p9), [#allocation2]  }
  0x12   : > { %s631_s6 = sshll.u32 (!%p142_p9), %s694_s5, 4  ;;  %s632_s6 = int_to_ptr.vmem [resolvable:$false] %s631_s6 }
  0x13   : > { %s633_s7 = scalar_lea.vmem (!%p142_p9), %s632_s6, 1024 }
  0x14   : > { %537 = vmatpush1.bf16.msra.mxu1 (!%p142_p9), %v693_v24 }
  0x15   : > { %s855_s24 = smov (!%p166_p10, %s504_s24), 7 }
  0x16   : > { %s505_s25 = sshll.u32 %s855_s24, 3  ;;  %s503_s24 = sshll.u32 %s162_s20, 5 }
  0x17   : > { %s169_s28 = scalar_lea.vmem %s844_s0, %s505_s25  ;;  %s164_s25 = scalar_lea.vmem [#allocation2], %s503_s24 }
  0x18   : > { %v173_v1 = vld [vmem:[%s169_s28 + $0x8] sm:$0xff]  ;;  %v172_v2 = vld [vmem:[%s169_s28] sm:$0xff]  ;;  %s437_s26 = sshll.u32 %s164_s25, 4  ;;  %s796_s26 = int_to_ptr.vmem [resolvable:$true] %s437_s26 }
  0x19   : > { %607 = vtanh.f32 %v173_v1  ;;  %s627_s16 = scalar_lea.vmem %s796_s26, 512  ;;  %p634_p0 = scmp.lt.s32.totalorder %s796_s26, %s632_s6 }
  0x1a   : > { %609 = vtanh.f32 %v172_v2  ;;  %p628_p11 = scmp.ne.s32.totalorder %s796_s26, %s627_s16  ;;  %p635_p1 = scmp.lt.s32.totalorder %s633_s7, %s627_s16 }
  0x1c   : > { %p629_p12 = pnand %p628_p11, %p756_p5  ;;  %p636_p2 = por %p635_p1, %p634_p0 }
  0x1e   : > { %p630_p13 = pneg %p629_p12 }
  0x20   : > { %p637_p3 = pnand %p636_p2, %p630_p13 }
  0x23   : > { %v608_v3 = vpop.eup %607 }
  0x24   : > { %v610_v4 = vpop.eup %609  ;;  %v526_v6 = vpack.c.bf16 %v608_v3, %v692_v5  ;;  %v177_v7 = vmul.f32 2.0, %v608_v3 }
  0x25   : > { %v528_v8 = vpack.c.bf16 %v610_v4, %v692_v5  ;;  %v176_v9 = vmul.f32 2.0, %v610_v4 }
  0x26   : > { %527 = vmatprep.subr.bf16.mxu0 %v526_v6  ;;  %v179_v10 = vmul.f32 %v608_v3, %v177_v7 }
  0x27   : > { %529 = vmatpush1.bf16.msra.mxu0 %v528_v8  ;;  %v178_v11 = vmul.f32 %v610_v4, %v176_v9 }
  0x28   : > { %v507_v12 = vadd.f32 -1.0, %v179_v10 }
  0x29   : > { %v506_v13 = vadd.f32 -1.0, %v178_v11 }
  0x2a   : > { %v183_v14 = vmul.f32 %v507_v12, %v177_v7 }
  0x2b   : > { %v182_v15 = vmul.f32 %v506_v13, %v176_v9 }
  0x2c   : > { %v185_v16 = vsub.f32 %v183_v14, %v608_v3 }
  0x2d   : > { %v184_v17 = vsub.f32 %v182_v15, %v610_v4 }
  0x2e   : > { %v530_v18 = vpack.c.bf16 %v185_v16, %v507_v12 }
  0x2f   : > { %v532_v19 = vpack.c.bf16 %v184_v17, %v506_v13 }
  0x30   : > { %531 = vmatprep.subr.bf16.mxu0 %v530_v18 }
  0x31   : > { %533 = vmatpush1.bf16.msra.mxu0 %v532_v19 }
  0x34   : > { %508 = vmatmul.mubr.msk.f32.vlgmr.msra.gmra.mrb[0].mxu0 %vm190_vm0, %v186_v20 }
  0x35   : > { %273 = vmatprep.mubr.f32.mxu0 %v691_v0 }
  0x38   : > { %509 = vmatmul.mubr.msk.f32.gmra.mrb[2].mxu0 %vm190_vm0, %v187_v21 }
  0x39   : > { %279 = vmatprep.mubr.f32.mxu0 %v691_v0 }
  0x3c   : > { %510 = vmatmul.mubr.msk.f32.gmra.mrb[4].mxu0 %vm190_vm0, %v188_v22 }
  0x3d   : > { %285 = vmatprep.mubr.f32.mxu0 %v691_v0 }
  0x40   : > { %511 = vmatmul.mubr.msk.f32.gmra.mrb[6].mxu0 %vm190_vm0, %v189_v23 }
 0x107   : > { %v269_v25 = vpop.f32.mrb[0].mxu0 }
 0x108   : > { %611 = vtanh.f32 %v269_v25  ;;  %v271_v26 = vpop.f32.mrb[1].mxu0 }
 0x109   : > { %613 = vtanh.f32 %v271_v26 }
 0x10b   : > { %v275_v27 = vpop.f32.mrb[2].mxu0 }
 0x10c   : > { %615 = vtanh.f32 %v275_v27  ;;  %v277_v28 = vpop.f32.mrb[3].mxu0 }
 0x10d   : > { %617 = vtanh.f32 %v277_v28 }
 0x10f   : > { %v281_v29 = vpop.f32.mrb[4].mxu0 }
 0x110   : > { %619 = vtanh.f32 %v281_v29  ;;  %v283_v30 = vpop.f32.mrb[5].mxu0 }
 0x111   : > { %621 = vtanh.f32 %v283_v30  ;;  %v340_v30 = vld [vmem:[%s846_s2] sm:$0xff] }
 0x112   : > { %v612_v31 = vpop.eup %611 }
 0x113   : > { %v614_v32 = vpop.eup %613  ;;  %v287_v33 = vpop.f32.mrb[6].mxu0  ;;  %v300_v34 = vmul.f32 2.0, %v612_v31 }
 0x114   : > { %623 = vtanh.f32 %v287_v33  ;;  %v289_v35 = vpop.f32.mrb[7].mxu0  ;;  %v301_v36 = vmul.f32 2.0, %v614_v32 }
 0x115   : > { %625 = vtanh.f32 %v289_v35  ;;  %v308_v37 = vmul.f32 %v612_v31, %v300_v34 }
 0x116   : > { %v616_v38 = vpop.eup %615  ;;  %v309_v39 = vmul.f32 %v614_v32, %v301_v36 }
 0x117   : > { %v618_v40 = vpop.eup %617  ;;  %v540_v41 = vpack.c.bf16 %v616_v38, %v612_v31  ;;  %v302_v42 = vmul.f32 2.0, %v616_v38  ;;  %v512_v43 = vadd.f32 -1.0, %v308_v37 }
 0x118   : > { %v538_v44 = vpack.c.bf16 %v618_v40, %v614_v32  ;;  %v303_v45 = vmul.f32 2.0, %v618_v40  ;;  %v513_v46 = vadd.f32 -1.0, %v309_v39 }
 0x119   : > { %v310_v47 = vmul.f32 %v616_v38, %v302_v42  ;;  %v324_v48 = vmul.f32 %v512_v43, %v300_v34 }
 0x11a   : > { %v620_v49 = vpop.eup %619  ;;  %539 = vmatprep.subr.bf16.mxu1 %v538_v44  ;;  %v311_v50 = vmul.f32 %v618_v40, %v303_v45  ;;  %v325_v51 = vmul.f32 %v513_v46, %v301_v36 }
 0x11b   : > { %v622_v52 = vpop.eup %621  ;;  %541 = vmatpush1.bf16.msra.mxu1 %v540_v41  ;;  %v514_v53 = vadd.f32 -1.0, %v310_v47  ;;  %v304_v54 = vmul.f32 2.0, %v620_v49  ;;  %v332_v60 = vsub.f32 %v324_v48, %v612_v31  ;;  %v341_v31 = vld [vmem:[%s846_s2 + $0x8] sm:$0xff] }
 0x11c   : > { %v515_v55 = vadd.f32 -1.0, %v311_v50  ;;  %v305_v56 = vmul.f32 2.0, %v622_v52  ;;  %v333_v2 = vsub.f32 %v325_v51, %v614_v32 }
 0x11d   : > { %v548_v57 = vpack.c.bf16 %v514_v53, %v512_v43  ;;  %v312_v58 = vmul.f32 %v620_v49, %v304_v54  ;;  %v326_v59 = vmul.f32 %v514_v53, %v302_v42 }
 0x11e   : > { %v624_v61 = vpop.eup %623  ;;  %v546_v62 = vpack.c.bf16 %v515_v55, %v513_v46  ;;  %v313_v63 = vmul.f32 %v622_v52, %v305_v56  ;;  %v327_v1 = vmul.f32 %v515_v55, %v303_v45 }
 0x11f   : > { %v626_v3 = vpop.eup %625  ;;  %v544_v4 = vpack.c.bf16 %v624_v61, %v620_v49  ;;  %v306_v5 = vmul.f32 2.0, %v624_v61  ;;  %v516_v6 = vadd.f32 -1.0, %v312_v58  ;;  %v334_v7 = vsub.f32 %v326_v59, %v616_v38 }
 0x120   : > { %v542_v8 = vpack.c.bf16 %v626_v3, %v622_v52  ;;  %v307_v9 = vmul.f32 2.0, %v626_v3  ;;  %v517_v10 = vadd.f32 -1.0, %v313_v63  ;;  %v335_v11 = vsub.f32 %v327_v1, %v618_v40 }
 0x121   : > { %v314_v12 = vmul.f32 %v624_v61, %v306_v5  ;;  %v556_v13 = vpack.c.bf16 %v334_v7, %v332_v60  ;;  %v328_v17 = vmul.f32 %v516_v6, %v304_v54 }
 0x122   : > { %543 = vmatprep.subr.bf16.mxu1 %v542_v8  ;;  %v315_v14 = vmul.f32 %v626_v3, %v307_v9  ;;  %v554_v15 = vpack.c.bf16 %v335_v11, %v333_v2  ;;  %v329_v19 = vmul.f32 %v517_v10, %v305_v56 }
 0x123   : > { %545 = vmatpush1.bf16.msra.mxu1 %v544_v4  ;;  %v518_v16 = vadd.f32 -1.0, %v314_v12  ;;  %v336_v24 = vsub.f32 %v328_v17, %v620_v49 }
 0x124   : > { %547 = vmatprep.subr.bf16.mxu1 %v546_v62  ;;  %v519_v18 = vadd.f32 -1.0, %v315_v14  ;;  %v337_v26 = vsub.f32 %v329_v19, %v622_v52 }
 0x125   : > { %v552_v20 = vpack.c.bf16 %v518_v16, %v516_v6  ;;  %v330_v21 = vmul.f32 %v518_v16, %v306_v5 }
 0x126   : > { %v550_v22 = vpack.c.bf16 %v519_v18, %v517_v10  ;;  %v331_v23 = vmul.f32 %v519_v18, %v307_v9 }
 0x127   : > { %549 = vmatpush1.bf16.msra.mxu1 %v548_v57  ;;  %v338_v25 = vsub.f32 %v330_v21, %v624_v61 }
 0x128   : > { %551 = vmatprep.subr.bf16.mxu1 %v550_v22  ;;  %v339_v27 = vsub.f32 %v331_v23, %v626_v3 }
 0x129   : > { %v560_v28 = vpack.c.bf16 %v338_v25, %v336_v24 }
 0x12a   : > { %v558_v29 = vpack.c.bf16 %v339_v27, %v337_v26 }
 0x12b   : > { %553 = vmatpush1.bf16.msra.mxu1 %v552_v20 }
 0x12c   : > { %555 = vmatprep.subr.bf16.mxu1 %v554_v15 }
 0x12f   : > { %557 = vmatpush1.bf16.msra.mxu1 %v556_v13 }
 0x130   : > { %559 = vmatprep.subr.bf16.mxu1 %v558_v29 }
 0x133   : > { %561 = vmatpush1.bf16.msra.mxu1 %v560_v28 }
 0x136   : > { %407 = vmatmul.mubr.f32.vlgmr.msra.gmra.mrb[0].mxu1 %v340_v30 }
 0x137   : > { %412 = vmatprep.mubr.f32.mxu1 %v691_v0 }
 0x13a   : > { %413 = vmatmul.mubr.f32.gmra.mrb[2].mxu1 %v341_v31 }
 0x209   : > { %v408_v32 = vpop.f32.mrb[0].mxu1 }
 0x20a   : > { %419 = vst [vmem:[%s164_s25] sm:$0xff] %v408_v32  ;;  %v410_v33 = vpop.f32.mrb[1].mxu1 }
 0x20b   : > { %420 = vst [vmem:[%s164_s25 + $0x8] sm:$0xff] %v410_v33 }
 0x20d   : > { %v414_v0 = vpop.f32.mrb[2].mxu1 }
 0x20e   : > { %421 = vst [vmem:[%s164_s25 + $0x10] sm:$0xff] %v414_v0  ;;  %v416_v34 = vpop.f32.mrb[3].mxu1 }
 0x20f   : > { %422 = vst [vmem:[%s164_s25 + $0x18] sm:$0xff] %v416_v34 }
 0x210   : > { %640 = shalt.err (!%p637_p3)
}
 0x211   : > { %s641_s8 = scalar_lea.hbm %s801_s30, 512  ;;  %s645_s11 = scalar_lea.hbm %s847_s3, 2048 }
 0x212   : > { %p642_p4 = scmp.ne.s32.totalorder %s801_s30, %s641_s8  ;;  %p646_p9 = scmp.lt.u32.totalorder %s801_s30, %s847_s3 }
 0x213   : > { %p647_p10 = scmp.lt.u32.totalorder %s645_s11, %s641_s8  ;;  %p649_p12 = scmp.lt.u32.totalorder %s641_s8, %s801_s30 }
 0x214   : > { %p643_p7 = pnand %p642_p4, %p756_p5 }
 0x215   : > { %p648_p11 = por %p647_p10, %p646_p9 }
 0x216   : > { %p644_p8 = pneg %p643_p7 }
 0x217   : > { %p650_p13 = por %p649_p12, %p648_p11 }
 0x219   : > { %p651_p0 = pnand %p650_p13, %p644_p8 }
 0x21b   : > { %654 = shalt.err (!%p651_p0)
}
 0x21c   : > { %s695_s20 = smov 256   ;;  %s696_s24 = smov 1024  }
 0x21d   : > { %s697_s25 = smov 16  }
 0x21e   : > { %562 = dma.vmem_to_hbm [thread:$0]  (%p756_p5), %s796_s26, 512, %s801_s30, %s803_s4, %s695_s20, %s696_s24, %s697_s25  }
 0x21f PF: > { %p568_p1 = scmp.ge.s32.totalorder %s689_s15, 2  ;;  %s452_s27 = sand.u32 1, %s677_s12  }
 0x220   : > { %s453_s28 = scalar_lea.sflag [#allocation3], %s452_s27 }
 0x221   : > { %p565_p2 = pnand %p568_p1, %p760_p6 }
 0x223   : > { %672 = dma.done.wait (!%p565_p2), %s453_s28, 512  }
 0x224   : > { %674 = vsyncadd (!%p565_p2), %s453_s28, 4294966784  ;;  %p13_p3 = scmp.ge.s32.totalorder %s743_s18, 6   ;;  %s850_s12 = smov %s681_s13 }
 0x225   : > { %s851_s13 = smov %s685_s14  ;;  %s852_s14 = smov %s754_s21 }
 0x226   : > { %s853_s15 = smov %s743_s18  ;;  %15 = sbr.rel (!%p13_p3) target bundleno = 3 (0x3), region = 67 }
 0x22d   :  { %458 = vsyncpa [#allocation3], 1 }
 0x22e   :  { %460 = vsyncpa [#allocation3 + $0x1], 1 }

</bundles_post_ra>
